<compile_context>
chip_gen: v5e
topology: v5e:2x2
jax: 0.10.0
libtpu: 0.0.40
codegen_flags: <defaults>
</compile_context>

<pallas_src>
import functools
import math

import jax
import jax.numpy as jnp
from jax.experimental import pallas as pl
from jax.experimental.pallas import tpu as pltpu


def _additive_attention_kernel(apply_dropout, valid_lens_ref, q_ref, k_ref, v_ref,
                               wq_ref, wk_ref, wv_ref, *rest):
    if apply_dropout:
        mask_ref, out_ref, attw_ref = rest
    else:
        out_ref, attw_ref = rest
        mask_ref = None

    b = pl.program_id(0)
    vlen = valid_lens_ref[b]                 # scalar (SMEM) valid length for this batch

    q = q_ref[0]                             # (Q, Dq)
    k = k_ref[0]                             # (K, Dk)
    v = v_ref[0]                             # (K, Dv)

    # Linear projections on the MXU (nn.Linear(bias=False): x @ W).
    qp = jnp.dot(q, wq_ref[...], preferred_element_type=jnp.float32)   # (Q, H)
    kp = jnp.dot(k, wk_ref[...], preferred_element_type=jnp.float32)   # (K, H)

    # features[i, j, :] = tanh(qp[i, :] + kp[j, :])   -> (Q, K, H)
    feat = jnp.tanh(qp[:, None, :] + kp[None, :, :])

    # scores[i, j] = sum_h w_v[h] * feat[i, j, h]     -> (Q, K)
    H = wv_ref.shape[-1]
    wv = wv_ref[...].reshape(1, 1, H)
    scores = jnp.sum(feat * wv, axis=-1)

    # masked softmax over keys (d2l: fill masked positions with -1e6).
    col = jax.lax.broadcasted_iota(jnp.int32, scores.shape, 1)
    scores = jnp.where(col < vlen, scores, jnp.float32(-1e6))
    m = jnp.max(scores, axis=-1, keepdims=True)
    e = jnp.exp(scores - m)
    w = e / jnp.sum(e, axis=-1, keepdims=True)

    # attention_weights (pre-dropout), matching self.attention_weights.
    attw_ref[0] = w.astype(attw_ref.dtype)

    if apply_dropout:
        w = w * mask_ref[0]                  # mask is already scaled by 1/(1-p)

    out_ref[0] = jnp.dot(w, v, preferred_element_type=jnp.float32).astype(out_ref.dtype)


def additive_attention(queries, keys, values, w_q, w_k, w_v, valid_lens=None,
                       *, dropout_mask=None):
    """queries: (B,Q,Dq), keys: (B,K,Dk), values: (B,K,Dv),
    w_q: (Dq,H), w_k: (Dk,H), w_v: (H,), valid_lens: None or (B,) int,
    dropout_mask: None or (B,Q,K) pre-scaled keep mask (Bernoulli(1-p)/(1-p)).
    Returns (output (B,Q,Dv), attention_weights (B,Q,K))."""
    B, Q, Dq = queries.shape
    Bk, K, Dk = keys.shape
    Bv, Kv, Dv = values.shape
    H = w_q.shape[1]
    assert Bk == B and Bv == B and Kv == K
    assert w_q.shape == (Dq, H) and w_k.shape == (Dk, H)
    w_v2 = jnp.asarray(w_v, jnp.float32).reshape(1, H)

    if valid_lens is None:
        vl = jnp.full((B,), K, dtype=jnp.int32)
    else:
        vl = jnp.asarray(valid_lens, jnp.int32).reshape(B)
    # TODO(synk): per-query (B, Q) valid_lens variant of d2l masked_softmax not supported.

    apply_dropout = dropout_mask is not None

    in_specs = [
        pl.BlockSpec((1, Q, Dq), lambda b, vlr: (b, 0, 0)),
        pl.BlockSpec((1, K, Dk), lambda b, vlr: (b, 0, 0)),
        pl.BlockSpec((1, K, Dv), lambda b, vlr: (b, 0, 0)),
        pl.BlockSpec((Dq, H), lambda b, vlr: (0, 0)),   # weights: constant block idx,
        pl.BlockSpec((Dk, H), lambda b, vlr: (0, 0)),   # stay resident in VMEM
        pl.BlockSpec((1, H), lambda b, vlr: (0, 0)),
    ]
    args = [vl, queries, keys, values, w_q, w_k, w_v2]
    if apply_dropout:
        in_specs.append(pl.BlockSpec((1, Q, K), lambda b, vlr: (b, 0, 0)))
        args.append(jnp.asarray(dropout_mask, queries.dtype))

    out_shape = (
        jax.ShapeDtypeStruct((B, Q, Dv), queries.dtype),
        jax.ShapeDtypeStruct((B, Q, K), jnp.float32),
    )
    out_specs = (
        pl.BlockSpec((1, Q, Dv), lambda b, vlr: (b, 0, 0)),
        pl.BlockSpec((1, Q, K), lambda b, vlr: (b, 0, 0)),
    )

    itemsize = 4
    flops = 2 * B * (Q * Dq * H + K * Dk * H + Q * K * H + Q * K * Dv)
    transcendentals = B * (Q * K * H + Q * K)          # tanh + exp
    bytes_accessed = itemsize * (
        B * (Q * Dq + K * Dk + K * Dv + Q * Dv + Q * K)
        + Dq * H + Dk * H + H
        + (B * Q * K if apply_dropout else 0)
    )

    kernel = functools.partial(_additive_attention_kernel, apply_dropout)

    return pl.pallas_call(
        kernel,
        out_shape=out_shape,
        grid_spec=pltpu.PrefetchScalarGridSpec(
            num_scalar_prefetch=1,
            grid=(B,),
            in_specs=in_specs,
            out_specs=out_specs,
        ),
        compiler_params=pltpu.CompilerParams(
            dimension_semantics=("parallel",),          # no cross-batch dependency
        ),
        cost_estimate=pl.CostEstimate(
            flops=flops, transcendentals=transcendentals, bytes_accessed=bytes_accessed),
    )(*args)


def _ref_additive_attention(queries, keys, values, w_q, w_k, w_v, valid_lens,
                            dropout_mask=None):
    qp = queries @ w_q
    kp = keys @ w_k
    feat = jnp.tanh(qp[:, :, None, :] + kp[:, None, :, :])
    scores = jnp.sum(feat * w_v[None, None, None, :], axis=-1)
    if valid_lens is not None:
        col = jnp.arange(scores.shape[-1])[None, None, :]
        scores = jnp.where(col < valid_lens[:, None, None], scores, -1e6)
    w = jax.nn.softmax(scores, axis=-1)
    wd = w if dropout_mask is None else w * dropout_mask
    return jnp.einsum('bqk,bkd->bqd', wd, values), w


if __name__ == "__main__":
    # Small shapes consistent with the module: batch=2, queries=4, keys=8,
    # query_size=key_size=16, num_hiddens=32, value_dim=32.
    B, Q, K = 2, 4, 8
    query_size, key_size, num_hiddens, value_dim = 16, 16, 32, 32
    dropout = 0.1

    key0 = jax.random.PRNGKey(0)
    kq, kk, kv, kwq, kwk, kwv, kd = jax.random.split(key0, 7)
    queries = jax.random.normal(kq, (B, Q, query_size), jnp.float32)
    keys = jax.random.normal(kk, (B, K, key_size), jnp.float32)
    values = jax.random.normal(kv, (B, K, value_dim), jnp.float32)
    w_q = jax.random.normal(kwq, (query_size, num_hiddens), jnp.float32) / math.sqrt(query_size)
    w_k = jax.random.normal(kwk, (key_size, num_hiddens), jnp.float32) / math.sqrt(key_size)
    w_v = jax.random.normal(kwv, (num_hiddens,), jnp.float32) / math.sqrt(num_hiddens)
    valid_lens = jnp.array([3, 8], dtype=jnp.int32)

    # Eval mode (dropout is identity).
    out, attw = additive_attention(queries, keys, values, w_q, w_k, w_v, valid_lens)
    out = jax.block_until_ready(out)
    attw = jax.block_until_ready(attw)
    ref_out, ref_w = _ref_additive_attention(queries, keys, values, w_q, w_k, w_v, valid_lens)
    assert out.shape == (B, Q, value_dim) and attw.shape == (B, Q, K)
    assert jnp.allclose(attw, ref_w, atol=2e-3, rtol=2e-3)
    assert jnp.allclose(out, ref_out, atol=2e-3, rtol=2e-3)
    # Rows sum to ~1 and masked tail of batch 0 is ~0.
    assert jnp.allclose(jnp.sum(attw, axis=-1), 1.0, atol=1e-4)
    assert float(jnp.max(jnp.abs(attw[0, :, 3:]))) < 1e-5

    # Training mode: inverted dropout on the attention weights via a
    # deterministic pre-scaled keep mask (same mask used for the reference).
    keep = jax.random.bernoulli(kd, 1.0 - dropout, (B, Q, K))
    drop_scale = keep.astype(jnp.float32) / (1.0 - dropout)
    out_tr, attw_tr = additive_attention(queries, keys, values, w_q, w_k, w_v,
                                         valid_lens, dropout_mask=drop_scale)
    out_tr = jax.block_until_ready(out_tr)
    ref_out_tr, _ = _ref_additive_attention(queries, keys, values, w_q, w_k, w_v,
                                            valid_lens, dropout_mask=drop_scale)
    assert jnp.allclose(out_tr, ref_out_tr, atol=2e-3, rtol=2e-3)
    assert jnp.allclose(attw_tr, ref_w, atol=2e-3, rtol=2e-3)  # weights are pre-dropout

    print("KERNEL_OK")
</pallas_src>

<mosaic_0001>
module attributes {stable_mosaic.version = 11 : i64} {
  func.func @_additive_attention_kernel(%arg0: i32, %arg1: memref<2xi32, #tpu.memory_space<smem>>, %arg2: memref<1x4x16xf32, #tpu.memory_space<vmem>>, %arg3: memref<1x8x16xf32, #tpu.memory_space<vmem>>, %arg4: memref<1x8x32xf32, #tpu.memory_space<vmem>>, %arg5: memref<16x32xf32, #tpu.memory_space<vmem>>, %arg6: memref<16x32xf32, #tpu.memory_space<vmem>>, %arg7: memref<1x32xf32, #tpu.memory_space<vmem>>, %arg8: memref<1x4x32xf32, #tpu.memory_space<vmem>>, %arg9: memref<1x4x8xf32, #tpu.memory_space<vmem>>) attributes {dimension_semantics = [#tpu.dimension_semantics<parallel>], iteration_bounds = array<i64: 2>, scalar_prefetch = 1 : i64, scratch_operands = 0 : i64, tpu.core_type = #tpu.core_type<tc>, window_params = [{transform_indices = @transform_0, window_bounds = array<i64: 1, 4, 16>}, {transform_indices = @transform_1, window_bounds = array<i64: 1, 8, 16>}, {transform_indices = @transform_2, window_bounds = array<i64: 1, 8, 32>}, {pipeline_mode = #tpu.pipeline_mode<synchronous>, transform_indices = @transform_3, window_bounds = array<i64: 16, 32>}, {pipeline_mode = #tpu.pipeline_mode<synchronous>, transform_indices = @transform_4, window_bounds = array<i64: 16, 32>}, {pipeline_mode = #tpu.pipeline_mode<synchronous>, transform_indices = @transform_5, window_bounds = array<i64: 1, 32>}, {transform_indices = @transform_6, window_bounds = array<i64: 1, 4, 32>}, {transform_indices = @transform_7, window_bounds = array<i64: 1, 4, 8>}]} {
    %0 = arith.index_cast %arg0 : i32 to index
    %1 = memref.load %arg1[%0] : memref<2xi32, #tpu.memory_space<smem>>
    %c0 = arith.constant 0 : index
    %c0_0 = arith.constant 0 : index
    %c0_1 = arith.constant 0 : index
    %2 = vector.load %arg2[%c0, %c0_0, %c0_1] : memref<1x4x16xf32, #tpu.memory_space<vmem>>, vector<1x4x16xf32>
    %3 = vector.shape_cast %2 : vector<1x4x16xf32> to vector<4x16xf32>
    %c0_2 = arith.constant 0 : index
    %c0_3 = arith.constant 0 : index
    %c0_4 = arith.constant 0 : index
    %4 = vector.load %arg3[%c0_2, %c0_3, %c0_4] : memref<1x8x16xf32, #tpu.memory_space<vmem>>, vector<1x8x16xf32>
    %5 = vector.shape_cast %4 : vector<1x8x16xf32> to vector<8x16xf32>
    %c0_5 = arith.constant 0 : index
    %c0_6 = arith.constant 0 : index
    %c0_7 = arith.constant 0 : index
    %6 = vector.load %arg4[%c0_5, %c0_6, %c0_7] : memref<1x8x32xf32, #tpu.memory_space<vmem>>, vector<1x8x32xf32>
    %7 = vector.shape_cast %6 : vector<1x8x32xf32> to vector<8x32xf32>
    %c0_8 = arith.constant 0 : index
    %c0_9 = arith.constant 0 : index
    %8 = vector.load %arg5[%c0_8, %c0_9] : memref<16x32xf32, #tpu.memory_space<vmem>>, vector<16x32xf32>
    %cst = arith.constant dense<0.000000e+00> : vector<4x32xf32>
    %9 = tpu.matmul %3, %8, %cst {dimension_numbers = #tpu.dot_dimension_numbers<[1], [0], [0], [1], [0, 0, 1, 1], [], []>} : vector<4x16xf32>, vector<16x32xf32>, vector<4x32xf32> -> vector<4x32xf32>
    %c0_10 = arith.constant 0 : index
    %c0_11 = arith.constant 0 : index
    %10 = vector.load %arg6[%c0_10, %c0_11] : memref<16x32xf32, #tpu.memory_space<vmem>>, vector<16x32xf32>
    %cst_12 = arith.constant dense<0.000000e+00> : vector<8x32xf32>
    %11 = tpu.matmul %5, %10, %cst_12 {dimension_numbers = #tpu.dot_dimension_numbers<[1], [0], [0], [1], [0, 0, 1, 1], [], []>} : vector<8x16xf32>, vector<16x32xf32>, vector<8x32xf32> -> vector<8x32xf32>
    %12 = vector.shape_cast %9 : vector<4x32xf32> to vector<4x1x32xf32>
    %13 = vector.shape_cast %11 : vector<8x32xf32> to vector<1x8x32xf32>
    %14 = vector.broadcast %12 : vector<4x1x32xf32> to vector<4x8x32xf32>
    %15 = vector.broadcast %13 : vector<1x8x32xf32> to vector<4x8x32xf32>
    %16 = arith.addf %14, %15 : vector<4x8x32xf32>
    %17 = math.tanh %16 : vector<4x8x32xf32>
    %c0_13 = arith.constant 0 : index
    %c0_14 = arith.constant 0 : index
    %18 = vector.load %arg7[%c0_13, %c0_14] : memref<1x32xf32, #tpu.memory_space<vmem>>, vector<1x32xf32>
    %19 = vector.shape_cast %18 : vector<1x32xf32> to vector<1x1x32xf32>
    %20 = vector.broadcast %19 : vector<1x1x32xf32> to vector<4x8x32xf32>
    %21 = arith.mulf %17, %20 : vector<4x8x32xf32>
    %cst_15 = arith.constant dense<0.000000e+00> : vector<4x8xf32>
    %22 = vector.multi_reduction <add>, %21, %cst_15 [2] : vector<4x8x32xf32> to vector<4x8xf32>
    %23 = tpu.iota {dimensions = array<i32: 1>} : vector<4x8xi32>
    %24 = vector.broadcast %1 : i32 to vector<4x8xi32>
    %25 = arith.cmpi slt, %23, %24 : vector<4x8xi32>
    %cst_16 = arith.constant -1.000000e+06 : f32
    %26 = vector.broadcast %cst_16 : f32 to vector<4x8xf32>
    %27 = arith.select %25, %22, %26 : vector<4x8xi1>, vector<4x8xf32>
    %cst_17 = arith.constant dense<0xFF800000> : vector<4xf32>
    %28 = vector.multi_reduction <maximumf>, %27, %cst_17 [1] : vector<4x8xf32> to vector<4xf32>
    %29 = vector.shape_cast %28 : vector<4xf32> to vector<4x1xf32>
    %30 = vector.broadcast %29 : vector<4x1xf32> to vector<4x8xf32>
    %31 = arith.subf %27, %30 : vector<4x8xf32>
    %32 = math.exp %31 : vector<4x8xf32>
    %cst_18 = arith.constant dense<0.000000e+00> : vector<4xf32>
    %33 = vector.multi_reduction <add>, %32, %cst_18 [1] : vector<4x8xf32> to vector<4xf32>
    %34 = vector.shape_cast %33 : vector<4xf32> to vector<4x1xf32>
    %35 = vector.broadcast %34 : vector<4x1xf32> to vector<4x8xf32>
    %36 = arith.divf %32, %35 : vector<4x8xf32>
    %c0_19 = arith.constant 0 : index
    %c0_20 = arith.constant 0 : index
    %c0_21 = arith.constant 0 : index
    %37 = vector.load %arg9[%c0_19, %c0_20, %c0_21] : memref<1x4x8xf32, #tpu.memory_space<vmem>>, vector<1x4x8xf32>
    %38 = vector.shape_cast %37 : vector<1x4x8xf32> to vector<4x8xf32>
    %39 = vector.shape_cast %36 : vector<4x8xf32> to vector<1x4x8xf32>
    tpu.vector_store %arg9[%c0_19, %c0_20, %c0_21], %39 {strides = array<i32>} : memref<1x4x8xf32, #tpu.memory_space<vmem>>, vector<1x4x8xf32>,
    %cst_22 = arith.constant dense<0.000000e+00> : vector<4x32xf32>
    %40 = tpu.matmul %36, %7, %cst_22 {dimension_numbers = #tpu.dot_dimension_numbers<[1], [0], [0], [1], [0, 0, 1, 1], [], []>} : vector<4x8xf32>, vector<8x32xf32>, vector<4x32xf32> -> vector<4x32xf32>
    %c0_23 = arith.constant 0 : index
    %c0_24 = arith.constant 0 : index
    %c0_25 = arith.constant 0 : index
    %41 = vector.load %arg8[%c0_23, %c0_24, %c0_25] : memref<1x4x32xf32, #tpu.memory_space<vmem>>, vector<1x4x32xf32>
    %42 = vector.shape_cast %41 : vector<1x4x32xf32> to vector<4x32xf32>
    %43 = vector.shape_cast %40 : vector<4x32xf32> to vector<1x4x32xf32>
    tpu.vector_store %arg8[%c0_23, %c0_24, %c0_25], %43 {strides = array<i32>} : memref<1x4x32xf32, #tpu.memory_space<vmem>>, vector<1x4x32xf32>,
    return
  }
  func.func @transform_0(%arg0: i32, %arg1: memref<2xi32, #tpu.memory_space<smem>>) -> (i32, i32, i32) {
    %c0_i32 = arith.constant 0 : i32
    %c0_i32_0 = arith.constant 0 : i32
    %c0_i32_1 = arith.constant 0 : i32
    return %arg0, %c0_i32, %c0_i32_0 : i32, i32, i32
  }
  func.func @transform_1(%arg0: i32, %arg1: memref<2xi32, #tpu.memory_space<smem>>) -> (i32, i32, i32) {
    %c0_i32 = arith.constant 0 : i32
    %c0_i32_0 = arith.constant 0 : i32
    %c0_i32_1 = arith.constant 0 : i32
    return %arg0, %c0_i32, %c0_i32_0 : i32, i32, i32
  }
  func.func @transform_2(%arg0: i32, %arg1: memref<2xi32, #tpu.memory_space<smem>>) -> (i32, i32, i32) {
    %c0_i32 = arith.constant 0 : i32
    %c0_i32_0 = arith.constant 0 : i32
    %c0_i32_1 = arith.constant 0 : i32
    return %arg0, %c0_i32, %c0_i32_0 : i32, i32, i32
  }
  func.func @transform_3(%arg0: i32, %arg1: memref<2xi32, #tpu.memory_space<smem>>) -> (i32, i32) {
    %c0_i32 = arith.constant 0 : i32
    %c0_i32_0 = arith.constant 0 : i32
    %c0_i32_1 = arith.constant 0 : i32
    return %c0_i32, %c0_i32_0 : i32, i32
  }
  func.func @transform_4(%arg0: i32, %arg1: memref<2xi32, #tpu.memory_space<smem>>) -> (i32, i32) {
    %c0_i32 = arith.constant 0 : i32
    %c0_i32_0 = arith.constant 0 : i32
    %c0_i32_1 = arith.constant 0 : i32
    return %c0_i32, %c0_i32_0 : i32, i32
  }
  func.func @transform_5(%arg0: i32, %arg1: memref<2xi32, #tpu.memory_space<smem>>) -> (i32, i32) {
    %c0_i32 = arith.constant 0 : i32
    %c0_i32_0 = arith.constant 0 : i32
    %c0_i32_1 = arith.constant 0 : i32
    return %c0_i32, %c0_i32_0 : i32, i32
  }
  func.func @transform_6(%arg0: i32, %arg1: memref<2xi32, #tpu.memory_space<smem>>) -> (i32, i32, i32) {
    %c0_i32 = arith.constant 0 : i32
    %c0_i32_0 = arith.constant 0 : i32
    %c0_i32_1 = arith.constant 0 : i32
    return %arg0, %c0_i32, %c0_i32_0 : i32, i32, i32
  }
  func.func @transform_7(%arg0: i32, %arg1: memref<2xi32, #tpu.memory_space<smem>>) -> (i32, i32, i32) {
    %c0_i32 = arith.constant 0 : i32
    %c0_i32_0 = arith.constant 0 : i32
    %c0_i32_1 = arith.constant 0 : i32
    return %arg0, %c0_i32, %c0_i32_0 : i32, i32, i32
  }
}

</mosaic_0001>

<bundles_post_ra>
// kernel: tpu_custom_call.1
= control target key start
LH: loop header
LB: loop body
LE: loop exit
PB: predicated region body
PF: predicated region fallthrough
CT: control target
= control target key end

     0   :  { %s1190_s30 = smov [#allocation3]   ;;  %s1480_s0 = inlined_call_operand.hbm [shape: s32[2], index: 0, kind: input, shape index: {}]   ;;  %s1481_s1 = inlined_call_operand.hbm [shape: f32[2,4,16], index: 1, kind: input, shape index: {}]   ;;  %s1482_s2 = inlined_call_operand.hbm [shape: f32[2,8,16], index: 2, kind: input, shape index: {}]   ;;  %s1483_s3 = inlined_call_operand.hbm [shape: f32[2,8,32], index: 3, kind: input, shape index: {}]   ;;  %s1484_s4 = inlined_call_operand.hbm [shape: f32[16,32], index: 4, kind: input, shape index: {}]   ;;  %s1485_s5 = inlined_call_operand.hbm [shape: f32[16,32], index: 5, kind: input, shape index: {}]   ;;  %s1486_s6 = inlined_call_operand.vmem [shape: f32[1,32], index: 6, kind: input, shape index: {}]   ;;  %s1487_s7 = inlined_call_operand.hbm [shape: f32[2,4,32], index: 7, kind: output, shape index: {0}]   ;;  %s1488_s8 = inlined_call_operand.hbm [shape: f32[2,4,8], index: 8, kind: output, shape index: {1}]  }
   0x1   :  { %1499 = sst [smem:[#allocation27_spill]] %s1482_s2  ;;  %s15_s29 = sshll.u32 %s1480_s0, 4  ;;  %s16_s29 = int_to_ptr.hbm [resolvable:$true] %s15_s29 }
   0x2   :  { %1500 = sst [smem:[#allocation28_spill]] %s1484_s4 }
   0x3   :  { %1501 = sst [smem:[#allocation29_spill]] %s1485_s5 }
   0x4   :  { %1502 = sst [smem:[#allocation30_spill]] %s1487_s7 }
   0x5   :  { %18 = dma.hbm_to_smem %s16_s29, 16, %s1190_s30, [#allocation2] }
   0x6   :  { %1152 = dma.done.wait [#allocation2], 16 }
   0x7   :  { %1153 = vsyncadd [#allocation2], 4294967280 }
   0x8   :  { %21 = sfence }
   0x9   :  { %22 = vsyncpa [#allocation5], 0 }
   0xa   :  { %24 = vsyncpa [#allocation5 + $0x1], 0 }
   0xb   :  { %25 = vsyncpa [#allocation8], 0 }
   0xc   :  { %27 = vsyncpa [#allocation8 + $0x1], 0 }
   0xd   :  { %28 = vsyncpa [#allocation11], 0 }
   0xe   :  { %29 = vsyncpa [#allocation6], 0 }
   0xf   :  { %31 = vsyncpa [#allocation6 + $0x1], 0 }
  0x10   :  { %32 = vsyncpa [#allocation15], 0 }
  0x11   :  { %34 = vsyncpa [#allocation15 + $0x1], 0  ;;  %s1243_s9 = smov 0   ;;  %s1245_s10 = smov 0  }
  0x12   :  { %s1247_s0 = smov 0   ;;  %s1249_s11 = smov 0  }
  0x13 LB: > { %1503 = sst [smem:[#allocation22_spill]] %s1176_s9  ;;  %s1267_s15 = sadd.s32 4294967295, %s1188_s11   ;;  %s1188_s11 = sphi %s1249_s11, %s1526_s11   ;;  %s1184_s0 = sphi %s1247_s0, %s1528_s0   ;;  %s1180_s10 = sphi %s1245_s10, %s1530_s10   ;;  %s1176_s9 = sphi %s1243_s9, %s1529_s9  }
  0x14   : > { %1504 = sst [smem:[#allocation23_spill]] %s1184_s0  ;;  %p793_p0 = scmp.ge.s32.totalorder %s1188_s11, 1 }
  0x15   : > { %s1505_s4 = sld [smem:[#allocation28_spill]]  ;;  %p1493_p1 = scmp.eq.s32.totalorder %s1267_s15, 0 }
  0x16   : > { %p238_p2 = scmp.lt.s32.totalorder %s1188_s11, 3  ;;  %s1191_s17 = smov [#allocation10]  }
  0x17   : > { %s251_s18 = sshll.u32 %s1191_s17, 4  ;;  %s1489_s20 = smov 128   ;;  %s252_s18 = int_to_ptr.vmem [resolvable:$true] %s251_s18 }
  0x18   : > { %p1272_p3 = pnand %p793_p0, %p238_p2  ;;  %s1490_s21 = smov 8  }
  0x19   : > { %s792_s22 = sadd.s32 4294967294, %s1188_s11   ;;  %s1292_s23 = sadd.s32 1, %s1188_s11  }
  0x1a   : > { %p838_p4 = pneg %p1272_p3  ;;  %1508 = sst [smem:[#allocation24_spill]] %s1292_s23 }
  0x1b   : > { %s249_s14 = sshll.u32 %s1505_s4, 4  ;;  %s47_s24 = sadd.s32 1, %s1184_s0  ;;  %s250_s14 = int_to_ptr.hbm [resolvable:$true] %s249_s14 }
  0x1c   : > { %p1281_p6 = pnand %p838_p4, %p1493_p1  ;;  %s44_s25 = ssub.s32 %s1188_s11, %s1292_s23 }
  0x1d   : > { %p54_p7 = scmp.ne.s32.totalorder %s1184_s0, %s1180_s10  ;;  %p45_p8 = scmp.eq.s32.totalorder %s44_s25, 0 }
  0x1e   : > { %841 = dma.hbm_to_vmem [thread:$0]  (!%p1281_p6), %s250_s14, 256, %s252_s18, [#allocation11], %s1489_s20, %s1489_s20, %s1490_s21  }
  0x1f   : > { %p55_p9 = scmp.eq.s32.totalorder %s1188_s11, 0  ;;  %p60_p10 = scmp.ne.s32.totalorder %s1180_s10, %s1176_s9 }
  0x20   : > { %p199_p11 = scmp.eq.s32.totalorder %s1267_s15, 1  ;;  %p205_p2 = scmp.eq.s32.totalorder %s792_s22, 1 }
  0x21   : > { %s1304_s26 = scalar_select %p45_p8, %s1184_s0, %s47_s24  }
  0x22   : > { %p56_p12 = por %p55_p9, %p54_p7  ;;  %p1308_p13 = por %p1493_p1, %p60_p10 }
  0x23   : > { %1509 = sst [smem:[#allocation25_spill]] %s1304_s26  ;;  %p1312_p0 = por %p199_p11, %p54_p7 }
  0x24   : > { %p864_p4 = scmp.lt.s32.totalorder %s1188_s11, 2  ;;  %s1318_s29 = sand.u32 1, %s1184_s0  }
  0x25   : > { %p1320_p5 = por %p205_p2, %p60_p10  ;;  %s301_s12 = sand.u32 1, %s1188_s11  }
  0x26   : > { %p1325_p8 = pnand %p864_p4, %p56_p12  ;;  %s1492_s14 = sshll.u32 %s1318_s29, 3 }
  0x27   : > { %s1512_s30 = scalar_select %p1320_p5, 1, 0 }
  0x28   : > { %s800_s17 = sshll.u32 %s1188_s11, 3  ;;  %s1515_s2 = sld [smem:[#allocation27_spill]] }
  0x29   : > { %1513 = sst [smem:[#allocation26_spill]] %s1512_s30  ;;  %s305_s25 = scalar_lea.vmem [#allocation7], %s1492_s14 }
  0x2a   : > { %s313_s20 = sshll.u32 %s305_s25, 4  ;;  %s1336_s4 = scalar_lea.sflag [#allocation8], %s301_s12  ;;  %s314_s20 = int_to_ptr.vmem [resolvable:$true] %s313_s20 }
  0x2b   : > { %p964_p9 = pneg %p1325_p8 }
  0x2e   : > { %s309_s24 = scalar_lea.hbm %s1515_s2, %s800_s17  ;;  %s967_s14 = scalar_lea.hbm %s1515_s2, 16 }
  0x2f   : > { %s311_s21 = sshll.u32 %s309_s24, 4  ;;  %s312_s21 = int_to_ptr.hbm [resolvable:$true] %s311_s21 }
  0x30   : > { %s960_s26 = sshra.s32 %s312_s21, 4  ;;  %s961_s26 = int_to_ptr.hbm [resolvable:$true] %s960_s26 }
  0x31   : > { %s962_s0 = scalar_lea.hbm %s961_s26, 8  ;;  %p968_p12 = scmp.lt.s32.totalorder %s961_s26, %s1515_s2 }
  0x32   : > { %p963_p7 = scmp.ne.s32.totalorder %s961_s26, %s962_s0  ;;  %p969_p2 = scmp.lt.s32.totalorder %s967_s14, %s962_s0 }
  0x34   : > { %p965_p10 = pnand %p964_p9, %p963_p7  ;;  %p970_p4 = por %p969_p2, %p968_p12 }
  0x36   : > { %p966_p11 = pneg %p965_p10 }
  0x38   : > { %p971_p1 = pnand %p970_p4, %p966_p11 }
  0x3a   : > { %974 = shalt.err (!%p971_p1)
}
  0x3b   : > { %851 = dma.hbm_to_vmem [thread:$0]  (!%p1325_p8), %s312_s21, 128, %s314_s20, %s1336_s4  }
  0x3c   : > { %s1355_s18 = scalar_lea.hbm %s1483_s3, %s800_s17  ;;  %s1516_s5 = sld [smem:[#allocation29_spill]] }
  0x3d   : > { %s1194_s26 = smov [#allocation12]   ;;  %s797_s25 = sshll.u32 %s1318_s29, 2 }
  0x3e   : > { %s265_s14 = sshll.u32 %s1194_s26, 4  ;;  %s1517_s24 = smov 8   ;;  %s266_s14 = int_to_ptr.vmem [resolvable:$true] %s265_s14 }
  0x3f   : > { %s1518_s20 = smov 128   ;;  %s798_s21 = sshll.u32 %s1188_s11, 2 }
  0x40   : > { %s290_s12 = scalar_lea.hbm %s1481_s1, %s798_s21  ;;  %s286_s30 = scalar_lea.vmem [#allocation4], %s797_s25 }
  0x41   : > { %s294_s22 = sshll.u32 %s286_s30, 4  ;;  %s292_s2 = sshll.u32 %s290_s12, 4  ;;  %s295_s22 = int_to_ptr.vmem [resolvable:$true] %s294_s22  ;;  %s293_s2 = int_to_ptr.hbm [resolvable:$true] %s292_s2 }
  0x42   : > { %s263_s0 = sshll.u32 %s1516_s5, 4  ;;  %s330_s5 = sshll.u32 %s1355_s18, 4  ;;  %s264_s0 = int_to_ptr.hbm [resolvable:$true] %s263_s0  ;;  %s331_s5 = int_to_ptr.hbm [resolvable:$true] %s330_s5 }
  0x43   : > { %844 = dma.hbm_to_vmem [thread:$0]  (!%p1281_p6), %s264_s0, 256, %s266_s14, [#allocation11], %s1518_s20, %s1518_s20, %s1517_s24  }
  0x44   : > { %s283_s26 = scalar_lea.sflag [#allocation5], %s1318_s29  ;;  %s1020_s9 = sshra.s32 %s293_s2, 4  ;;  %s1021_s9 = int_to_ptr.hbm [resolvable:$true] %s1020_s9 }
  0x45   : > { %s1022_s7 = scalar_lea.hbm %s1021_s9, 4  ;;  %s1027_s14 = scalar_lea.hbm %s1481_s1, 8 }
  0x46   : > { %p1023_p1 = scmp.ne.s32.totalorder %s1021_s9, %s1022_s7  ;;  %p1028_p10 = scmp.lt.s32.totalorder %s1021_s9, %s1481_s1 }
  0x47   : > { %p1029_p11 = scmp.lt.s32.totalorder %s1027_s14, %s1022_s7 }
  0x48   : > { %p1025_p7 = pnand %p1023_p1, %p964_p9 }
  0x49   : > { %p1030_p12 = por %p1029_p11, %p1028_p10 }
  0x4a   : > { %p1026_p6 = pneg %p1025_p7 }
  0x4c   : > { %p1031_p2 = pnand %p1030_p12, %p1026_p6 }
  0x4e   : > { %1034 = shalt.err (!%p1031_p2)
}
  0x4f   : > { %848 = dma.hbm_to_vmem [thread:$0]  (!%p1325_p8), %s293_s2, 64, %s295_s22, %s283_s26  }
  0x50   : > { %s1519_s18 = sshll.u32 %s1318_s29, 3  ;;  %s1050_s23 = sshra.s32 %s331_s5, 4  ;;  %s1051_s23 = int_to_ptr.hbm [resolvable:$true] %s1050_s23 }
  0x51   : > { %s324_s20 = scalar_lea.vmem [#allocation9], %s1519_s18  ;;  %s1052_s17 = scalar_lea.hbm %s1051_s23, 8 }
  0x52   : > { %s332_s21 = sshll.u32 %s324_s20, 4  ;;  %p1053_p4 = scmp.ne.s32.totalorder %s1051_s23, %s1052_s17  ;;  %s333_s21 = int_to_ptr.vmem [resolvable:$true] %s332_s21 }
  0x53   : > { %s1057_s12 = scalar_lea.hbm %s1483_s3, 16  ;;  %p1058_p6 = scmp.lt.s32.totalorder %s1051_s23, %s1483_s3 }
  0x54   : > { %p1055_p1 = pnand %p1053_p4, %p964_p9  ;;  %p1059_p10 = scmp.lt.s32.totalorder %s1057_s12, %s1052_s17 }
  0x56   : > { %p1056_p7 = pneg %p1055_p1  ;;  %p1060_p11 = por %p1059_p10, %p1058_p6 }
  0x58   : > { %p1061_p12 = pnand %p1060_p11, %p1056_p7 }
  0x5a   : > { %1064 = shalt.err (!%p1061_p12)
}
  0x5b   : > { %854 = dma.hbm_to_vmem [thread:$0]  (!%p1325_p8), %s331_s5, 128, %s333_s21, %s1336_s4  }
  0x5c   : > { %341 = sbr.rel (%p1272_p3) target bundleno = 777 (0x309), region = 44  ;;  %s1400_s2 = sand.u32 (!%p1272_p3), 1, %s1180_s10  }
  0x5d   : > { %s1403_s29 = sshll.u32 (!%p1272_p3), %s1400_s2, 2  ;;  %s344_s22 = scalar_lea.sflag (!%p1272_p3), [#allocation5], %s1400_s2 }
  0x5e   : > { %s347_s26 = scalar_lea.vmem (!%p1272_p3), [#allocation4], %s1403_s29 }
  0x61   : > { %1155 = dma.done.wait (%p1308_p13), %s344_s22, 64  }
  0x62   : > { %1157 = vsyncadd (%p1308_p13), %s344_s22, 4294967232  ;;  %s353_s4 = sand.u32 1, %s1267_s15   ;;  %s805_s5 = sshll.u32 %s1400_s2, 3 }
  0x63   : > { %s354_s16 = scalar_lea.sflag [#allocation8], %s353_s4  ;;  %s357_s13 = scalar_lea.vmem [#allocation7], %s805_s5 }
  0x64   : > { %1159 = dma.done.wait (%p1308_p13), %s354_s16, 256  }
  0x65   : > { %1161 = vsyncadd (%p1308_p13), %s354_s16, 4294967040  ;;  %s1417_s0 = scalar_lea.vmem [#allocation9], %s805_s5  ;;  %p1520_p3 = scmp.eq.s32.totalorder %s1267_s15, 0 }
  0x67   : > { %1163 = dma.done.wait (%p1520_p3), [#allocation11], 512   ;;  %p1521_p8 = pmov %p1520_p3 }
  0x68   : > { %v429_v0 = vld [vmem:[#allocation10 + $0x8] sm:$0xff]  ;;  %v428_v1 = vld [vmem:[#allocation10] sm:$0xff]  ;;  %v455_v2 = vld [vmem:[#allocation12 + $0x8] sm:$0xff]  ;;  %vm430_vm0 = vcmask 130048   ;;  %vm507_vm1 = vcmask 261120   ;;  %v520_v33 = vlaneseq  ;;  %s424_s24 = sld [smem:[#allocation3 + %s1267_s15]] }
  0x69   : > { %1165 = vsyncadd (%p1521_p8), [#allocation11], 4294966784  ;;  %448 = vmatpush.msra.mxu0 %v429_v0  ;;  %473 = vmatpush.msra.mxu1 %v455_v2  ;;  %v425_v3 = vld [vmem:[%s347_s26] sm:$0xf]  ;;  %v454_v4 = vld [vmem:[#allocation12] sm:$0xff]  ;;  %vm532_vm2 = vcmask 1041409  }
  0x6a   : > { %v426_v5 = vld [vmem:[%s357_s13] sm:$0xff]  ;;  %v905_v19 = vld [vmem:[%s1486_s6] ss:$0 sm:$0xff]  ;;  %v521_v35 = vand.u32 127, %v520_v33  ;;  %vm534_vm3 = vcmask 1042434   ;;  %vm536_vm4 = vcmask 1043459  }
  0x6b   : > { %449 = vmatpush.msra.mxu0 %v428_v1  ;;  %474 = vmatpush.msra.mxu1 %v454_v4  ;;  %vm540_vm6 = vcmask 60416   ;;  %v427_v53 = vld [vmem:[%s1417_s0] sm:$0xff]  ;;  %vm566_vm11 = vcmask 64512   ;;  %s423_s25 = scalar_lea.vmem [#allocation14], %s1403_s29  ;;  %s816_s18 = sshll.u32 %s1267_s15, 2 }
  0x6c   : > { %811 = vmatmul.msk.f32.vlgmr.msra.gmra.mxu0 %vm430_vm0, %v425_v3  ;;  %812 = vmatmul.msk.f32.vlgmr.msra.gmra.mxu1 %vm430_vm0, %v426_v5  ;;  %s622_s23 = scalar_lea.hbm %s1488_s8, %s816_s18  ;;  %s624_s17 = sshll.u32 %s423_s25, 4  ;;  %s625_s17 = int_to_ptr.vmem [resolvable:$true] %s624_s17 }
  0x6d   : > { %585 = vmatpush.msra.mxu2 %v427_v53  ;;  %s626_s7 = sshll.u32 %s622_s23, 4  ;;  %s598_s9 = scalar_lea.sflag [#allocation15], %s1400_s2  ;;  %s627_s7 = int_to_ptr.hbm [resolvable:$true] %s626_s7 }
  0x6e   : > { %v522_v39 = vstv %s424_s24  ;;  %s1094_s12 = sshra.s32 %s627_s7, 4  ;;  %s1100_s15 = scalar_lea.hbm %s1488_s8, 8  ;;  %s1095_s12 = int_to_ptr.hbm [resolvable:$true] %s1094_s12 }
  0x6f   : > { %vm523_vm5 = vcmp.lt.s32.totalorder %v521_v35, %v522_v39  ;;  %s1096_s30 = scalar_lea.hbm %s1095_s12, 4  ;;  %p1101_p4 = scmp.lt.s32.totalorder %s1095_s12, %s1488_s8 }
  0x70   : > { %p1097_p13 = scmp.ne.s32.totalorder %s1095_s12, %s1096_s30  ;;  %p1102_p1 = scmp.lt.s32.totalorder %s1100_s15, %s1096_s30 }
  0x72   : > { %p1098_p9 = pnand %p1097_p13, %p1312_p0  ;;  %p1103_p7 = por %p1102_p1, %p1101_p4 }
  0x74   : > { %p1099_p2 = pneg %p1098_p9 }
  0x76   : > { %p1104_p6 = pnand %p1103_p7, %p1099_p2 }
  0xe9   : > { %v451_v6 = vpop.f32.mrf.mxu0  ;;  %v476_v7 = vpop.f32.mrf.mxu1 }
  0xea   : > { %v480_v8 = vrot.slane %v451_v6, 1  ;;  %v481_v9 = vrot.slane %v451_v6, 2  ;;  %v482_v10 = vrot.slane %v451_v6, 3  ;;  %v483_v11 = vperm.slane %v451_v6, 0 }
  0xec   : > { %v484_v12 = vperm.slane %v480_v8, 0  ;;  %v485_v13 = vperm.slane %v481_v9, 0  ;;  %v491_v14 = vadd.f32 %v483_v11, %v476_v7  ;;  %v486_v15 = vperm.slane %v482_v10, 0 }
  0xee   : > { %v492_v16 = vadd.f32 %v484_v12, %v476_v7  ;;  %v493_v17 = vadd.f32 %v485_v13, %v476_v7  ;;  %906 = vtanh.f32 %v491_v14  ;;  %v494_v18 = vadd.f32 %v486_v15, %v476_v7 }
  0xf0   : > { %908 = vtanh.f32 %v493_v17 }
  0xf1   : > { %910 = vtanh.f32 %v492_v16 }
  0xf2   : > { %912 = vtanh.f32 %v494_v18 }
  0xf4   : > { %v907_v20 = vpop.eup %906 }
  0xf5   : > { %v503_v21 = vmul.f32 %v907_v20, %v905_v19 }
  0xf6   : > { %v909_v22 = vpop.eup %908 }
  0xf7   : > { %v508_v23 = vsel %vm507_vm1, %v503_v21, 0.0  ;;  %v911_v24 = vpop.eup %910  ;;  %v505_v25 = vmul.f32 %v909_v22, %v905_v19 }
  0xf8   : > { %509 = vadd.xlane.f32.xlu0 %v508_v23  ;;  %v913_v27 = vpop.eup %912  ;;  %v504_v28 = vmul.f32 %v911_v24, %v905_v19 }
  0xf9   : > { %v514_v26 = vsel %vm507_vm1, %v505_v25, 0.0  ;;  %v506_v29 = vmul.f32 %v913_v27, %v905_v19 }
  0xfa   : > { %515 = vadd.xlane.f32.xlu1 %v514_v26  ;;  %v511_v30 = vsel %vm507_vm1, %v504_v28, 0.0 }
  0xfb   : > { %v517_v31 = vsel %vm507_vm1, %v506_v29, 0.0 }
 0x100   : > { %512 = vadd.xlane.f32.xlu0 %v511_v30 }
 0x102   : > { %518 = vadd.xlane.f32.xlu1 %v517_v31 }
 0x16b   : > { %v510_v32 = vpop.xlane.xlu0 %509 }
 0x16c   : > { %v528_v37 = vperm.slane %v510_v32, %v521_v35 }
 0x16d   : > { %v516_v34 = vpop.xlane.xlu1 %515 }
 0x16e   : > { %v530_v40 = vperm.slane %v516_v34, %v521_v35 }
 0x173   : > { %v513_v36 = vpop.xlane.xlu0 %512 }
 0x174   : > { %v529_v38 = vperm.slane %v513_v36, %v521_v35 }
 0x175   : > { %v519_v42 = vpop.xlane.xlu1 %518 }
 0x176   : > { %v533_v41 = vsel %vm532_vm2, %v529_v38, %v528_v37  ;;  %v531_v43 = vperm.slane %v519_v42, %v521_v35 }
 0x177   : > { %v535_v44 = vsel %vm534_vm3, %v530_v40, %v533_v41 }
 0x178   : > { %v537_v45 = vsel %vm536_vm4, %v531_v43, %v535_v44 }
 0x179   : > { %v539_v46 = vsel %vm523_vm5, %v537_v45, -1000000.0 }
 0x17a   : > { %v541_v47 = vsel %vm540_vm6, %v539_v46, -inf }
 0x17b   : > { %542 = vmax.xlane.f32.xlu2 %v541_v47 }
 0x1ee   : > { %v543_v48 = vpop.xlane.xlu2 %542 }
 0x1ef   : > { %v544_v49 = vsub.f32 %v539_v46, %v543_v48 }
 0x1f1   : > { %v545_v50 = vmul.f32 1.442695, %v544_v49 }
 0x1f3   : > { %914 = vpow2.f32 %v545_v50 }
 0x1f9   : > { %v915_v51 = vpop.eup %914 }
 0x1fa   : > { %v547_v52 = vsel %vm540_vm6, %v915_v51, 0.0 }
 0x1fb   : > { %548 = vadd.xlane.f32.xlu2 %v547_v52 }
 0x26e   : > { %v549_v54 = vpop.xlane.xlu2 %548 }
 0x26f   : > { %916 = vrcp.f32 %v549_v54  ;;  %v561_v58 = vand.u32 2147483648, %v549_v54  ;;  %v559_v60 = vand.u32 2147483647, %v549_v54  ;;  %vm555_vm8 = vweird.f32 %v549_v54 }
 0x271   : > { %v562_v62 = vor.u32 1.1754944e-38, %v561_v58  ;;  %vm560_vm10 = vcmp.eq.f32.partialorder %v559_v60, 8.507059e+37 }
 0x275   : > { %v917_v55 = vpop.eup %916 }
 0x276   : > { %v551_v56 = vmul.f32 %v917_v55, %v549_v54  ;;  %vm556_vm7 = vweird.f32 %v917_v55 }
 0x277   : > { %vm557_vm9 = vmor %vm555_vm8, %vm556_vm7 }
 0x278   : > { %v552_v57 = vsub.f32 1.0, %v551_v56 }
 0x27a   : > { %v553_v59 = vmul.f32 %v917_v55, %v552_v57 }
 0x27c   : > { %v554_v61 = vadd.f32 %v917_v55, %v553_v59 }
 0x27e   : > { %v558_v63 = vsel %vm557_vm9, %v917_v55, %v554_v61 }
 0x27f   : > { %v563_v0 = vsel %vm560_vm10, %v562_v62, %v558_v63 }
 0x280   : > { %v564_v1 = vmul.f32 %v915_v51, %v563_v0 }
 0x282   : > { %813 = vmatmul.msk.f32.vlgmr.msra.gmra.mxu2 %vm566_vm11, %v564_v1  ;;  %565 = vst.msk [vmem:[%s423_s25] sm:$0xf] %vm540_vm6, %v564_v1 }
 0x283   : > { %1107 = shalt.err (!%p1104_p6)
}
 0x284   : > { %835 = dma.vmem_to_hbm [thread:$0]  (%p1312_p0), %s625_s17, 64, %s627_s7, %s598_s9   ;;  %vm590_vm12 = vcmask 257024  }
 0x285   : > { %s1522_s13 = sld [smem:[#allocation30_spill]]  ;;  %s416_s27 = scalar_lea.vmem [#allocation13], %s1403_s29 }
 0x286   : > { %s610_s14 = sshll.u32 %s416_s27, 4  ;;  %s593_s25 = scalar_lea.sflag [#allocation6], %s1400_s2  ;;  %s611_s14 = int_to_ptr.vmem [resolvable:$true] %s610_s14 }
 0x28b   : > { %s608_s0 = scalar_lea.hbm %s1522_s13, %s816_s18  ;;  %s1128_s18 = scalar_lea.hbm %s1522_s13, 8 }
 0x28c   : > { %s612_s24 = sshll.u32 %s608_s0, 4  ;;  %s613_s24 = int_to_ptr.hbm [resolvable:$true] %s612_s24 }
 0x28d   : > { %s1122_s20 = sshra.s32 %s613_s24, 4  ;;  %s1123_s20 = int_to_ptr.hbm [resolvable:$true] %s1122_s20 }
 0x28e   : > { %s1124_s21 = scalar_lea.hbm %s1123_s20, 4  ;;  %p1129_p3 = scmp.lt.s32.totalorder %s1123_s20, %s1522_s13 }
 0x28f   : > { %p1125_p10 = scmp.ne.s32.totalorder %s1123_s20, %s1124_s21  ;;  %p1130_p8 = scmp.lt.s32.totalorder %s1128_s18, %s1124_s21 }
 0x291   : > { %p1126_p11 = pnand %p1125_p10, %p1312_p0  ;;  %p1131_p13 = por %p1130_p8, %p1129_p3 }
 0x293   : > { %p1127_p12 = pneg %p1126_p11 }
 0x295   : > { %p1132_p9 = pnand %p1131_p13, %p1127_p12 }
 0x305   : > { %v587_v2 = vpop.f32.mrf.mxu2 }
 0x306   : > { %591 = vst.msk [vmem:[%s416_s27] sm:$0xf] %vm590_vm12, %v587_v2 }
 0x307   : > { %1135 = shalt.err (!%p1132_p9)
}
 0x308   : > { %834 = dma.vmem_to_hbm [thread:$0]  (%p1312_p0), %s611_s14, 64, %s613_s24, %s593_s25  }
 0x309 PF: > { %s1523_s2 = sld [smem:[#allocation22_spill]]  ;;  %p1525_p2 = scmp.ge.s32.totalorder %s1188_s11, 2 }
 0x30b   : > { %p856_p4 = pnand %p1525_p2, %p1320_p5 }
 0x30d   : > { %p857_p1 = pneg %p856_p4 }
 0x30f   : > { %s638_s12 = sand.u32 1, %s1523_s2  }
 0x310   : > { %s639_s30 = scalar_lea.sflag [#allocation6], %s638_s12 }
 0x311   : > { %1167 = dma.done.wait (%p857_p1), %s639_s30, 64  }
 0x312   : > { %1169 = vsyncadd (%p857_p1), %s639_s30, 4294967232  ;;  %s649_s19 = scalar_lea.sflag [#allocation15], %s638_s12 }
 0x313   : > { %1171 = dma.done.wait (%p857_p1), %s649_s19, 64  }
 0x314   : > { %1173 = vsyncadd (%p857_p1), %s649_s19, 4294967232  ;;  %s1526_s11 = sld [smem:[#allocation24_spill]]  ;;  %s1529_s9 = smov %s1180_s10 }
 0x315   : > { %s1527_s22 = sld [smem:[#allocation23_spill]] }
 0x316   : > { %s1528_s0 = sld [smem:[#allocation25_spill]] }
 0x31a   : > { %p37_p0 = scmp.ge.s32.totalorder %s1526_s11, 4  }
 0x31b   : > { %s1530_s10 = smov %s1527_s22 }
 0x31c   :  { %39 = sbr.rel (!%p37_p0) target bundleno = 19 (0x13), region = 138 }
 0x321   :  { %655 = vsyncpa [#allocation5], 1 }
 0x322   :  { %657 = vsyncpa [#allocation5 + $0x1], 1 }
 0x323   :  { %658 = vsyncpa [#allocation8], 1 }
 0x324   :  { %660 = vsyncpa [#allocation8 + $0x1], 1 }
 0x325   :  { %661 = vsyncpa [#allocation11], 1 }
 0x326   :  { %662 = vsyncpa [#allocation6], 1 }
 0x327   :  { %664 = vsyncpa [#allocation6 + $0x1], 1 }
 0x328   :  { %665 = vsyncpa [#allocation15], 1 }
 0x329   :  { %667 = vsyncpa [#allocation15 + $0x1], 1 }

</bundles_post_ra>
